<compile_context>
chip_gen: v5e
topology: v5e:2x2
jax: 0.10.0
libtpu: 0.0.40
codegen_flags: <defaults>
</compile_context>

<pallas_src>
import functools

import jax
import jax.numpy as jnp
import numpy as np
from jax.experimental import pallas as pl
from jax.experimental.pallas import tpu as pltpu

_LANE = 128


def _round_up(x, m):
    return (x + m - 1) // m * m


def _lm_head_kernel(h_ref, w_ref, b_ref, o_ref):
    """One logits tile: (tile_m, H) f32 @ (H, tile_n) bf16 + bias -> bf16.

    h_ref : (tile_m, H)     f32  — row tile of the flattened hidden states.
    w_ref : (H, tile_n)     bf16 — projection weight tile (VMEM-resident).
    b_ref : (1, tile_n)     f32  — projection bias tile.
    o_ref : (tile_m, tile_n) bf16 — lane-dense logits tile.
    """
    h = h_ref[...].astype(jnp.bfloat16)          # VPU cast; HBM read stays f32-once
    acc = jnp.dot(h, w_ref[...], preferred_element_type=jnp.float32)
    o_ref[...] = (acc + b_ref[...]).astype(o_ref.dtype)


def _device_defaults():
    """Generation-aware (default_tile_m, vmem_limit_bytes)."""
    try:
        kind = jax.devices()[0].device_kind.lower()
    except Exception:  # pragma: no cover - defensive
        kind = ""
    if "7" in kind:
        # v7x: 64 MiB VMEM per TC (2 TCs), 3.2 TB/s HBM -> budget carefully.
        return 512, 48 * 1024 * 1024
    # v5e / v6e: 128 MiB physical VMEM, single TC -> big tiles amortize
    # the ~0.35 us per-grid-step overhead on the slower HBM.
    return 1024, 64 * 1024 * 1024


def prepare_lm_head_params(weight, bias, lane=_LANE):
    """One-time head-parameter prep (NOT per forward call).

    weight : (V, H) f32 — PyTorch nn.Linear weight layout.
    bias   : (V,)   f32.
    Returns (w_t_padded_bf16 (H, V_pad), bias_padded_f32 (1, V_pad), V).
    """
    V, H = weight.shape
    V_pad = _round_up(V, lane)
    w_t = jnp.pad(weight.T.astype(jnp.bfloat16), ((0, 0), (0, V_pad - V)))
    b = jnp.pad(jnp.reshape(bias, (1, V)).astype(jnp.float32),
                ((0, 0), (0, V_pad - V)))
    return w_t, b, V


def lm_head(hidden, w_t, bias, n_vocab, mode, *, single_buffer_weight=True,
            out_dtype=jnp.bfloat16):
    """Apply the CLM/MLM projection head via pallas_call.

    hidden : (B, S, H) f32  — hidden_states[-1] from the former (fed as-is).
    w_t    : (H, V_pad) bf16 — pre-padded transposed Linear weight.
    bias   : (1, V_pad) f32  — pre-padded Linear bias.
    n_vocab: int            — true vocab size V = len(e2w) (static).
    mode   : 'mlm' -> proj(hidden[:, 1:, :]); else -> proj(hidden[:, :-1, :]).
    """
    B, S, H = hidden.shape
    H_w, V_pad = w_t.shape
    assert H_w == H

    default_tile_m, vmem_limit = _device_defaults()

    # N tiling only when the weight alone would blow the VMEM budget (large
    # vocab on v7x); for len(e2w)-sized heads V_pad is a single lane tile.
    if H * V_pad * 2 > 8 * 1024 * 1024:
        tile_n = min(V_pad, 4 * _LANE)
    else:
        tile_n = V_pad
    grid_n = pl.cdiv(V_pad, tile_n)

    # Flattened (B, S) rows go straight into the matmul M dimension; no HBM
    # pad/copy of the activations (partial last tile is masked by Pallas).
    M = B * S
    w_bufs = 1 if (single_buffer_weight and grid_n == 1) else 2
    w_bytes = H * tile_n * 2 * w_bufs
    per_row = 2 * H * 4 + 2 * tile_n * 2          # dbl-buf f32 in + bf16 out
    budget = int(vmem_limit * 0.7) - w_bytes - 2 * tile_n * 4
    tile_m = min(default_tile_m, max(8, budget // per_row // 8 * 8))
    if M < 16:
        tile_m = _round_up(M, 8)
    elif M <= tile_m:
        # Prefer >= 2 row tiles so the "parallel" axis can actually shard
        # across the two v7x TensorCores even for small inputs.
        tile_m = _round_up((M + 1) // 2, 8)
    grid_m = pl.cdiv(M, tile_m)

    h2d = hidden.reshape(M, H)                    # view-only; stays f32 in HBM

    # Constant-index weight/bias blocks never get re-DMA'ed; double-buffering
    # them would be pure VMEM waste.
    w_kwargs = {"pipeline_mode": pl.Buffered(1)} if w_bufs == 1 else {}

    grid_spec = pltpu.PrefetchScalarGridSpec(
        num_scalar_prefetch=0,
        grid=(grid_n, grid_m),                    # n outer: weight stays put
        in_specs=[
            pl.BlockSpec((tile_m, H), lambda j, i: (i, 0)),
            pl.BlockSpec((H, tile_n), lambda j, i: (0, j), **w_kwargs),
            pl.BlockSpec((1, tile_n), lambda j, i: (0, j), **w_kwargs),
        ],
        out_specs=pl.BlockSpec((tile_m, tile_n), lambda j, i: (i, j)),
    )

    out = pl.pallas_call(
        _lm_head_kernel,
        out_shape=jax.ShapeDtypeStruct((M, V_pad), out_dtype),
        grid_spec=grid_spec,
        compiler_params=pltpu.CompilerParams(
            dimension_semantics=("parallel", "parallel"),
            vmem_limit_bytes=vmem_limit,
        ),
        cost_estimate=pl.CostEstimate(
            flops=2 * M * H * V_pad,
            transcendentals=0,
            bytes_accessed=(M * H * 4 + H * V_pad * 2 + V_pad * 4
                            + M * V_pad * int(np.dtype(out_dtype).itemsize)),
        ),
    )(h2d, w_t, bias)

    # Single fused epilogue (under jit): drop padded vocab columns, restore
    # (B, S, V), static MLM/CLM row shift.  Doing the row drop here keeps the
    # in-kernel access fully aligned; one extra row of MXU work is free.
    logits = out[:, :n_vocab].reshape(B, S, n_vocab)
    return logits[:, 1:, :] if mode == "mlm" else logits[:, :-1, :]


def midi_former_stub(x_tokens, attn, params, mode):
    """Stand-in for MidiFormer.forward -> hidden_states[-1].

    # TODO(synk): MidiFormer / BertModel encoder internals (embeddings,
    # self-attention stack, is_decoder causal masking) are not in the
    # provided source; a deterministic embedding lookup produces the
    # (B, S, H) hidden states consumed by the LM heads.  `attn` is unused.
    """
    del attn, mode
    return jnp.take(params["embedding"], x_tokens, axis=0)  # (B, S, H) f32


@functools.partial(jax.jit,
                   static_argnames=("n_vocab", "mode", "single_buffer_weight"))
def midiformer_lm_forward(x_tokens, attn, params, n_vocab, mode="mlm",
                          single_buffer_weight=True):
    hidden = midi_former_stub(x_tokens, attn, params, mode)  # (B, S, H)
    if mode == "mlm":
        return lm_head(hidden, params["mlm_w_t"], params["mlm_b"], n_vocab,
                       "mlm", single_buffer_weight=single_buffer_weight)
    return lm_head(hidden, params["clm_w_t"], params["clm_b"], n_vocab,
                   "clm", single_buffer_weight=single_buffer_weight)


if __name__ == "__main__":
    B, S, H, V = 2, 8, 32, 40  # batch, seq, hidden_size, len(e2w)

    key = jax.random.PRNGKey(0)
    k_emb, k_mw, k_mb, k_cw, k_cb, k_x = jax.random.split(key, 6)

    # Deterministic synthetic parameters (PyTorch Linear weight is (V, H)).
    emb = jax.random.normal(k_emb, (V, H), dtype=jnp.float32) * 0.02
    mlm_w = jax.random.normal(k_mw, (V, H), dtype=jnp.float32) * 0.02
    mlm_b = jax.random.normal(k_mb, (V,), dtype=jnp.float32) * 0.02
    clm_w = jax.random.normal(k_cw, (V, H), dtype=jnp.float32) * 0.02
    clm_b = jax.random.normal(k_cb, (V,), dtype=jnp.float32) * 0.02

    # Weight / bias padded + cast ONCE here (not per forward call).
    mlm_w_t, mlm_b_p, n_vocab = prepare_lm_head_params(mlm_w, mlm_b)
    clm_w_t, clm_b_p, _ = prepare_lm_head_params(clm_w, clm_b)

    params = {
        "embedding": emb,
        "mlm_w_t": mlm_w_t, "mlm_b": mlm_b_p,
        "clm_w_t": clm_w_t, "clm_b": clm_b_p,
    }

    x_tokens = jax.random.randint(k_x, (B, S), 0, V, dtype=jnp.int32)
    attn = jnp.ones((B, S), dtype=jnp.float32)

    def _run(single_buffer):
        om = jax.block_until_ready(
            midiformer_lm_forward(x_tokens, attn, params, n_vocab=n_vocab,
                                  mode="mlm",
                                  single_buffer_weight=single_buffer))
        oc = jax.block_until_ready(
            midiformer_lm_forward(x_tokens, attn, params, n_vocab=n_vocab,
                                  mode="clm",
                                  single_buffer_weight=single_buffer))
        return om, oc

    try:
        out_mlm, out_clm = _run(True)
    except Exception:
        # Fallback if single-buffered (pl.Buffered(1)) specs are rejected by
        # the installed Pallas/Mosaic version.
        out_mlm, out_clm = _run(False)

    # Pure-JAX reference of the head semantics (same bf16 operands, f32
    # accumulation, bf16 output rounding).
    hidden = jnp.take(emb, x_tokens, axis=0)
    h_r = hidden.astype(jnp.bfloat16).astype(jnp.float32)
    mw_r = mlm_w.astype(jnp.bfloat16).astype(jnp.float32)
    cw_r = clm_w.astype(jnp.bfloat16).astype(jnp.float32)
    ref_mlm = (h_r[:, 1:, :] @ mw_r.T + mlm_b).astype(jnp.bfloat16)
    ref_clm = (h_r[:, :-1, :] @ cw_r.T + clm_b).astype(jnp.bfloat16)

    assert out_mlm.shape == (B, S - 1, V) and out_clm.shape == (B, S - 1, V)
    np.testing.assert_allclose(np.asarray(out_mlm, dtype=np.float32),
                               np.asarray(ref_mlm, dtype=np.float32),
                               rtol=2e-2, atol=1e-3)
    np.testing.assert_allclose(np.asarray(out_clm, dtype=np.float32),
                               np.asarray(ref_clm, dtype=np.float32),
                               rtol=2e-2, atol=1e-3)

    print("KERNEL_OK")
</pallas_src>

<mosaic_0001>
module attributes {stable_mosaic.version = 11 : i64} {
  func.func @_lm_head_kernel(%arg0: i32, %arg1: i32, %arg2: memref<8x32xf32, #tpu.memory_space<vmem>>, %arg3: memref<32x128xbf16, #tpu.memory_space<vmem>>, %arg4: memref<1x128xf32, #tpu.memory_space<vmem>>, %arg5: memref<8x128xbf16, #tpu.memory_space<vmem>>) attributes {dimension_semantics = [#tpu.dimension_semantics<parallel>, #tpu.dimension_semantics<parallel>], iteration_bounds = array<i64: 1, 2>, scalar_prefetch = 0 : i64, scratch_operands = 0 : i64, tpu.core_type = #tpu.core_type<tc>, window_params = [{transform_indices = @transform_0, window_bounds = array<i64: 8, 32>}, {pipeline_mode = #tpu.pipeline_mode<synchronous>, transform_indices = @transform_1, window_bounds = array<i64: 32, 128>}, {pipeline_mode = #tpu.pipeline_mode<synchronous>, transform_indices = @transform_2, window_bounds = array<i64: 1, 128>}, {transform_indices = @transform_3, window_bounds = array<i64: 8, 128>}]} {
    %c0 = arith.constant 0 : index
    %c0_0 = arith.constant 0 : index
    %0 = vector.load %arg2[%c0, %c0_0] : memref<8x32xf32, #tpu.memory_space<vmem>>, vector<8x32xf32>
    %1 = arith.truncf %0 : vector<8x32xf32> to vector<8x32xbf16>
    %c0_1 = arith.constant 0 : index
    %c0_2 = arith.constant 0 : index
    %2 = vector.load %arg3[%c0_1, %c0_2] : memref<32x128xbf16, #tpu.memory_space<vmem>>, vector<32x128xbf16>
    %cst = arith.constant dense<0.000000e+00> : vector<8x128xf32>
    %3 = tpu.matmul %1, %2, %cst {dimension_numbers = #tpu.dot_dimension_numbers<[1], [0], [0], [1], [0, 0, 1, 1], [], []>} : vector<8x32xbf16>, vector<32x128xbf16>, vector<8x128xf32> -> vector<8x128xf32>
    %c0_3 = arith.constant 0 : index
    %c0_4 = arith.constant 0 : index
    %4 = vector.load %arg4[%c0_3, %c0_4] : memref<1x128xf32, #tpu.memory_space<vmem>>, vector<1x128xf32>
    %5 = vector.broadcast %4 : vector<1x128xf32> to vector<8x128xf32>
    %6 = arith.addf %3, %5 : vector<8x128xf32>
    %7 = arith.truncf %6 : vector<8x128xf32> to vector<8x128xbf16>
    %c0_5 = arith.constant 0 : index
    %c0_6 = arith.constant 0 : index
    %8 = vector.load %arg5[%c0_5, %c0_6] : memref<8x128xbf16, #tpu.memory_space<vmem>>, vector<8x128xbf16>
    tpu.vector_store %arg5[%c0_5, %c0_6], %7 {strides = array<i32>} : memref<8x128xbf16, #tpu.memory_space<vmem>>, vector<8x128xbf16>,
    return
  }
  func.func @transform_0(%arg0: i32, %arg1: i32) -> (i32, i32) {
    %c0_i32 = arith.constant 0 : i32
    %c0_i32_0 = arith.constant 0 : i32
    return %arg1, %c0_i32 : i32, i32
  }
  func.func @transform_1(%arg0: i32, %arg1: i32) -> (i32, i32) {
    %c0_i32 = arith.constant 0 : i32
    %c0_i32_0 = arith.constant 0 : i32
    return %c0_i32, %arg0 : i32, i32
  }
  func.func @transform_2(%arg0: i32, %arg1: i32) -> (i32, i32) {
    %c0_i32 = arith.constant 0 : i32
    %c0_i32_0 = arith.constant 0 : i32
    return %c0_i32, %arg0 : i32, i32
  }
  func.func @transform_3(%arg0: i32, %arg1: i32) -> (i32, i32) {
    %c0_i32 = arith.constant 0 : i32
    return %arg1, %arg0 : i32, i32
  }
}

module attributes {stable_mosaic.version = 11 : i64} {
  func.func @_lm_head_kernel(%arg0: i32, %arg1: i32, %arg2: memref<8x32xf32, #tpu.memory_space<vmem>>, %arg3: memref<32x128xbf16, #tpu.memory_space<vmem>>, %arg4: memref<1x128xf32, #tpu.memory_space<vmem>>, %arg5: memref<8x128xbf16, #tpu.memory_space<vmem>>) attributes {dimension_semantics = [#tpu.dimension_semantics<parallel>, #tpu.dimension_semantics<parallel>], iteration_bounds = array<i64: 1, 2>, scalar_prefetch = 0 : i64, scratch_operands = 0 : i64, tpu.core_type = #tpu.core_type<tc>, window_params = [{transform_indices = @transform_0, window_bounds = array<i64: 8, 32>}, {transform_indices = @transform_1, window_bounds = array<i64: 32, 128>}, {transform_indices = @transform_2, window_bounds = array<i64: 1, 128>}, {transform_indices = @transform_3, window_bounds = array<i64: 8, 128>}]} {
    %c0 = arith.constant 0 : index
    %c0_0 = arith.constant 0 : index
    %0 = vector.load %arg2[%c0, %c0_0] : memref<8x32xf32, #tpu.memory_space<vmem>>, vector<8x32xf32>
    %1 = arith.truncf %0 : vector<8x32xf32> to vector<8x32xbf16>
    %c0_1 = arith.constant 0 : index
    %c0_2 = arith.constant 0 : index
    %2 = vector.load %arg3[%c0_1, %c0_2] : memref<32x128xbf16, #tpu.memory_space<vmem>>, vector<32x128xbf16>
    %cst = arith.constant dense<0.000000e+00> : vector<8x128xf32>
    %3 = tpu.matmul %1, %2, %cst {dimension_numbers = #tpu.dot_dimension_numbers<[1], [0], [0], [1], [0, 0, 1, 1], [], []>} : vector<8x32xbf16>, vector<32x128xbf16>, vector<8x128xf32> -> vector<8x128xf32>
    %c0_3 = arith.constant 0 : index
    %c0_4 = arith.constant 0 : index
    %4 = vector.load %arg4[%c0_3, %c0_4] : memref<1x128xf32, #tpu.memory_space<vmem>>, vector<1x128xf32>
    %5 = vector.broadcast %4 : vector<1x128xf32> to vector<8x128xf32>
    %6 = arith.addf %3, %5 : vector<8x128xf32>
    %7 = arith.truncf %6 : vector<8x128xf32> to vector<8x128xbf16>
    %c0_5 = arith.constant 0 : index
    %c0_6 = arith.constant 0 : index
    %8 = vector.load %arg5[%c0_5, %c0_6] : memref<8x128xbf16, #tpu.memory_space<vmem>>, vector<8x128xbf16>
    tpu.vector_store %arg5[%c0_5, %c0_6], %7 {strides = array<i32>} : memref<8x128xbf16, #tpu.memory_space<vmem>>, vector<8x128xbf16>,
    return
  }
  func.func @transform_0(%arg0: i32, %arg1: i32) -> (i32, i32) {
    %c0_i32 = arith.constant 0 : i32
    %c0_i32_0 = arith.constant 0 : i32
    return %arg1, %c0_i32 : i32, i32
  }
  func.func @transform_1(%arg0: i32, %arg1: i32) -> (i32, i32) {
    %c0_i32 = arith.constant 0 : i32
    %c0_i32_0 = arith.constant 0 : i32
    return %c0_i32, %arg0 : i32, i32
  }
  func.func @transform_2(%arg0: i32, %arg1: i32) -> (i32, i32) {
    %c0_i32 = arith.constant 0 : i32
    %c0_i32_0 = arith.constant 0 : i32
    return %c0_i32, %arg0 : i32, i32
  }
  func.func @transform_3(%arg0: i32, %arg1: i32) -> (i32, i32) {
    %c0_i32 = arith.constant 0 : i32
    return %arg1, %arg0 : i32, i32
  }
}

</mosaic_0001>

<bundles_post_ra>
// kernel: midiformer_lm_forward.1
= control target key start
LH: loop header
LB: loop body
LE: loop exit
PB: predicated region body
PF: predicated region fallthrough
CT: control target
= control target key end

     0   :  { %s449_s12 = smov 0   ;;  %s451_s13 = smov 0   ;;  %s488_s0 = inlined_call_operand.vmem [shape: f32[16,32], index: 0, kind: input, shape index: {}]   ;;  %s489_s1 = inlined_call_operand.vmem [shape: bf16[32,128], index: 1, kind: input, shape index: {}]   ;;  %s490_s2 = inlined_call_operand.vmem [shape: f32[1,128], index: 2, kind: input, shape index: {}]   ;;  %s491_s3 = inlined_call_operand.vmem [shape: bf16[16,128], index: 3, kind: output, shape index: {}]  }
   0x1   :  { %s453_s14 = smov 0  }
   0x2 LB: > { %s22_s15 = sadd.s32 1, %s423_s13  ;;  %p364_p0 = scmp.ge.s32.totalorder %s427_s14, 1  ;;  %s427_s14 = sphi %s453_s14, %s13_s14   ;;  %s423_s13 = sphi %s451_s13, %s493_s13   ;;  %s419_s12 = sphi %s449_s12, %s492_s12  }
   0x3   : > { %p23_p1 = scmp.ge.s32.totalorder %s22_s15, 2  ;;  %p167_p2 = scmp.lt.s32.totalorder %s427_s14, 3 }
   0x5   : > { %s495_s15 = smov (%p23_p1, %s22_s15), 0  ;;  %p168_p3 = pnand %p364_p0, %p167_p2 }
   0x6   : > { %p199_p4 = scmp.lt.s32.totalorder (!%p168_p3), %s419_s12, 1 }
   0x7   : > { %171 = sbr.rel (%p168_p3) target bundleno = 154 (0x9a), region = 32 }
   0xc   : > { %v379_v0 = vld [vmem:[%s489_s1 + $0x8] sm:$0xff]  ;;  %v378_v1 = vld [vmem:[%s489_s1] sm:$0xff]  ;;  %s497_s12 = smov (!%p199_p4, %s419_s12), 1  ;;  %vm240_vm0 = vcmask 261120  }
   0xd   : > { %250 = vmatpush.bf16.msra.mxu0 %v379_v0  ;;  %s365_s20 = sshll.u32 %s497_s12, 3  ;;  %v404_v4 = vld [vmem:[%s490_s2] ss:$0 sm:$0xff]  ;;  %s366_s26 = sshll.u32 %s497_s12, 2 }
   0xe   : > { %s202_s23 = scalar_lea.vmem %s488_s0, %s365_s20  ;;  %s216_s29 = scalar_lea.vmem %s491_s3, %s366_s26 }
   0xf   : > { %v218_v2 = vld [vmem:[%s202_s23] sm:$0xff] }
  0x10   : > { %v219_v3 = vpack.c.bf16 %v218_v2, %v218_v2 }
  0x11   : > { %251 = vmatpush.bf16.msra.mxu0 %v378_v1 }
  0x14   : > { %375 = vmatmul.msk.bf16.vlgmr.msra.gmra.mxu0 %vm240_vm0, %v219_v3 }
  0x91   : > { %v253_v5 = vpop.f32.mrf.mxu0 }
  0x92   : > { %v254_v6 = vadd.f32 %v404_v4, %v253_v5 }
  0x94   : > { %v257_v7 = vpack.c.bf16 %v254_v6, %v254_v6 }
  0x96   : > { %258 = vst [vmem:[%s216_s29] sm:$0xf] %v257_v7 }
  0x99   : > { %v255_v8 = vpop.f32.mrf.mxu0 }
  0x9a PF: > { %s13_s14 = sadd.s32 1, %s427_s14   ;;  %s492_s12 = smov %s423_s13 }
  0x9b   : > { %p10_p5 = scmp.ge.s32.totalorder %s13_s14, 4   ;;  %s493_s13 = smov %s495_s15 }
  0x9d   :  { %12 = sbr.rel (!%p10_p5) target bundleno = 2 (0x2), region = 68 }

// kernel: midiformer_lm_forward.1
= control target key start
LH: loop header
LB: loop body
LE: loop exit
PB: predicated region body
PF: predicated region fallthrough
CT: control target
= control target key end

     0   :  { %s449_s12 = smov 0   ;;  %s451_s13 = smov 0   ;;  %s488_s0 = inlined_call_operand.vmem [shape: f32[16,32], index: 0, kind: input, shape index: {}]   ;;  %s489_s1 = inlined_call_operand.vmem [shape: bf16[32,128], index: 1, kind: input, shape index: {}]   ;;  %s490_s2 = inlined_call_operand.vmem [shape: f32[1,128], index: 2, kind: input, shape index: {}]   ;;  %s491_s3 = inlined_call_operand.vmem [shape: bf16[16,128], index: 3, kind: output, shape index: {}]  }
   0x1   :  { %s453_s14 = smov 0  }
   0x2 LB: > { %s22_s15 = sadd.s32 1, %s423_s13  ;;  %p364_p0 = scmp.ge.s32.totalorder %s427_s14, 1  ;;  %s427_s14 = sphi %s453_s14, %s13_s14   ;;  %s423_s13 = sphi %s451_s13, %s493_s13   ;;  %s419_s12 = sphi %s449_s12, %s492_s12  }
   0x3   : > { %p23_p1 = scmp.ge.s32.totalorder %s22_s15, 2  ;;  %p167_p2 = scmp.lt.s32.totalorder %s427_s14, 3 }
   0x5   : > { %s495_s15 = smov (%p23_p1, %s22_s15), 0  ;;  %p168_p3 = pnand %p364_p0, %p167_p2 }
   0x6   : > { %p199_p4 = scmp.lt.s32.totalorder (!%p168_p3), %s419_s12, 1 }
   0x7   : > { %171 = sbr.rel (%p168_p3) target bundleno = 154 (0x9a), region = 32 }
   0xc   : > { %v379_v0 = vld [vmem:[%s489_s1 + $0x8] sm:$0xff]  ;;  %v378_v1 = vld [vmem:[%s489_s1] sm:$0xff]  ;;  %s497_s12 = smov (!%p199_p4, %s419_s12), 1  ;;  %vm240_vm0 = vcmask 261120  }
   0xd   : > { %250 = vmatpush.bf16.msra.mxu0 %v379_v0  ;;  %s365_s20 = sshll.u32 %s497_s12, 3  ;;  %v404_v4 = vld [vmem:[%s490_s2] ss:$0 sm:$0xff]  ;;  %s366_s26 = sshll.u32 %s497_s12, 2 }
   0xe   : > { %s202_s23 = scalar_lea.vmem %s488_s0, %s365_s20  ;;  %s216_s29 = scalar_lea.vmem %s491_s3, %s366_s26 }
   0xf   : > { %v218_v2 = vld [vmem:[%s202_s23] sm:$0xff] }
  0x10   : > { %v219_v3 = vpack.c.bf16 %v218_v2, %v218_v2 }
  0x11   : > { %251 = vmatpush.bf16.msra.mxu0 %v378_v1 }
  0x14   : > { %375 = vmatmul.msk.bf16.vlgmr.msra.gmra.mxu0 %vm240_vm0, %v219_v3 }
  0x91   : > { %v253_v5 = vpop.f32.mrf.mxu0 }
  0x92   : > { %v254_v6 = vadd.f32 %v404_v4, %v253_v5 }
  0x94   : > { %v257_v7 = vpack.c.bf16 %v254_v6, %v254_v6 }
  0x96   : > { %258 = vst [vmem:[%s216_s29] sm:$0xf] %v257_v7 }
  0x99   : > { %v255_v8 = vpop.f32.mrf.mxu0 }
  0x9a PF: > { %s13_s14 = sadd.s32 1, %s427_s14   ;;  %s492_s12 = smov %s423_s13 }
  0x9b   : > { %p10_p5 = scmp.ge.s32.totalorder %s13_s14, 4   ;;  %s493_s13 = smov %s495_s15 }
  0x9d   :  { %12 = sbr.rel (!%p10_p5) target bundleno = 2 (0x2), region = 68 }

</bundles_post_ra>
